<compile_context>
chip_gen: v7x
topology: tpu7x:2x2x1
jax: 0.10.0
libtpu: 0.0.40
codegen_flags: <defaults>
</compile_context>

<pallas_src>
import jax
import jax.numpy as jnp
from jax.experimental import pallas as pl
from jax.experimental.pallas import tpu as pltpu

# Packed bf16 matmul-weight slab layout (rows x 128 lanes), 16-row aligned:
#   rows [  0,  16): W1  (in padded 6 -> 16,   out = 128)
#   rows [ 16, 144): W2  (in = 128,            out padded 64 -> 128, zeros)
#   rows [144, 272): W3  (in padded 64 -> 128, out padded 32 -> 128, zeros)
_W1_R0, _W2_R0, _W3_R0, _WM_ROWS = 0, 16, 144, 272
_XPAD = 16  # input features padded 6 -> 16 (bf16 sublane-tile aligned K)

# Packed f32 "VPU" slab (8 rows x 128 lanes):
#   row 0: w4 as a lane vector (lanes [0,32) valid, rest 0)
#   row 1: b1 ; row 2: b2 (lanes<64) ; row 3: b3 (lanes<32) ; row 4: b4 (all lanes)
_WV_ROWS = 8


def _mlp_kernel(x_ref, wm_ref, wv_ref, o_ref):
    x = x_ref[...]                                  # (TB, 16) f32, zero-padded feats
    w1 = wm_ref[_W1_R0:_W2_R0, :]                   # (16, 128)  bf16
    w2 = wm_ref[_W2_R0:_W3_R0, :]                   # (128, 128) bf16 (cols>=64 zero)
    w3 = wm_ref[_W3_R0:_WM_ROWS, :]                 # (128, 128) bf16 (rows>=64 / cols>=32 zero)
    w4 = wv_ref[0:1, :]                             # (1, 128) f32 (lanes>=32 zero)
    b1 = wv_ref[1:2, :]
    b2 = wv_ref[2:3, :]
    b3 = wv_ref[3:4, :]
    b4 = wv_ref[4:5, :]                             # b4 broadcast across all lanes

    h = jnp.dot(x.astype(jnp.bfloat16), w1, preferred_element_type=jnp.float32)
    h = jnp.maximum(h + b1, 0.0)
    h = jnp.dot(h.astype(jnp.bfloat16), w2, preferred_element_type=jnp.float32)
    h = jnp.maximum(h + b2, 0.0)
    h = jnp.dot(h.astype(jnp.bfloat16), w3, preferred_element_type=jnp.float32)
    h = jnp.maximum(h + b3, 0.0)
    # Final 32 -> 1 layer on VPU/XLU (multiply + lane reduce), folded into a
    # lane-dense output block: every lane of a row holds the same scalar.
    y = jnp.sum(h * w4, axis=-1, keepdims=True)     # (TB, 1)
    o_ref[...] = jnp.broadcast_to(y, o_ref.shape) + b4


def _round_up(n, m):
    return (n + m - 1) // m * m


def consciousness_nn_forward(x, wm, wv, *, tile_b=256):
    """x: (B, 6) float32.  wm, wv: packed weight slabs from pack_params()."""
    B, F = x.shape
    tb = min(tile_b, _round_up(B, 8))            # shrink tile for small batches
    b_pad = _round_up(B, tb)

    # Host-side padding: features 6 -> 16, batch -> multiple of tile.
    x16 = jnp.zeros((b_pad, _XPAD), jnp.float32)
    x16 = x16.at[:B, :F].set(x.astype(jnp.float32))

    flops = 2 * b_pad * (6 * 128 + 128 * 64 + 64 * 32 + 32)
    bytes_accessed = x16.size * 4 + b_pad * 128 * 4 + wm.size * 2 + wv.size * 4

    out = pl.pallas_call(
        _mlp_kernel,
        out_shape=jax.ShapeDtypeStruct((b_pad, 128), jnp.float32),
        grid=(b_pad // tb,),
        in_specs=[
            pl.BlockSpec((tb, _XPAD), lambda i: (i, 0)),       # streamed per tile
            pl.BlockSpec((_WM_ROWS, 128), lambda i: (0, 0)),   # resident bf16 weights
            pl.BlockSpec((_WV_ROWS, 128), lambda i: (0, 0)),   # resident f32 biases/w4
        ],
        out_specs=pl.BlockSpec((tb, 128), lambda i: (i, 0)),   # lane-dense stores
        compiler_params=pltpu.CompilerParams(
            dimension_semantics=("parallel",)),
        cost_estimate=pl.CostEstimate(
            flops=flops, transcendentals=0, bytes_accessed=bytes_accessed),
    )(x16, wm, wv)
    return out[:B, :1]


def init_params(key, input_size=6, hidden_sizes=(128, 64, 32)):
    """Deterministic init mirroring nn.Linear default (uniform(-1/sqrt(in), 1/sqrt(in))).
    Weights stored pre-transposed as (in, out). Packing below assumes (128, 64, 32)."""
    sizes = [input_size] + list(hidden_sizes) + [1]
    params = []
    for i in range(len(sizes) - 1):
        fan_in, fan_out = sizes[i], sizes[i + 1]
        key, kw, kb = jax.random.split(key, 3)
        bound = 1.0 / jnp.sqrt(float(fan_in))
        w_t = jax.random.uniform(kw, (fan_in, fan_out), jnp.float32, -bound, bound)
        b = jax.random.uniform(kb, (1, fan_out), jnp.float32, -bound, bound)
        params.append((w_t, b))
    return params


def pack_params(params):
    """Pack (W_t, b) list into (bf16 matmul slab, f32 VPU slab)."""
    (w1, b1), (w2, b2), (w3, b3), (w4, b4) = params
    wm = jnp.zeros((_WM_ROWS, 128), jnp.float32)
    wm = wm.at[_W1_R0:_W1_R0 + w1.shape[0], :w1.shape[1]].set(w1)
    wm = wm.at[_W2_R0:_W2_R0 + w2.shape[0], :w2.shape[1]].set(w2)
    wm = wm.at[_W3_R0:_W3_R0 + w3.shape[0], :w3.shape[1]].set(w3)
    wm = wm.astype(jnp.bfloat16)

    wv = jnp.zeros((_WV_ROWS, 128), jnp.float32)
    wv = wv.at[0, :w4.shape[0]].set(w4[:, 0])
    wv = wv.at[1, :b1.shape[1]].set(b1[0])
    wv = wv.at[2, :b2.shape[1]].set(b2[0])
    wv = wv.at[3, :b3.shape[1]].set(b3[0])
    wv = wv.at[4, :].set(b4[0, 0])
    return wm, wv


def _reference_forward(x, params):
    """Pure-JAX reference mirroring the kernel numerics (bf16 matmul operands,
    f32 accumulation / bias / ReLU; final 32->1 layer fully in f32)."""
    (w1, b1), (w2, b2), (w3, b3), (w4, b4) = params
    h = x.astype(jnp.float32)
    for w, b in ((w1, b1), (w2, b2), (w3, b3)):
        h = jnp.dot(h.astype(jnp.bfloat16), w.astype(jnp.bfloat16),
                    preferred_element_type=jnp.float32)
        h = jnp.maximum(h + b, 0.0)
    return jnp.dot(h, w4) + b4


if __name__ == "__main__":
    params = init_params(jax.random.PRNGKey(0))
    wm, wv = pack_params(params)

    # Batch large enough to exercise the batch grid (2 tiles of 256).
    x = jax.random.normal(jax.random.PRNGKey(1), (512, 6), jnp.float32)
    out = jax.block_until_ready(consciousness_nn_forward(x, wm, wv))
    ref = _reference_forward(x, params)
    assert out.shape == (512, 1), out.shape
    assert jnp.allclose(out, ref, atol=1e-4, rtol=1e-4), \
        float(jnp.max(jnp.abs(out - ref)))

    # Tiny batch path (tile shrinks to the batch, single grid step).
    x2 = jax.random.normal(jax.random.PRNGKey(2), (8, 6), jnp.float32)
    out2 = jax.block_until_ready(consciousness_nn_forward(x2, wm, wv))
    ref2 = _reference_forward(x2, params)
    assert out2.shape == (8, 1), out2.shape
    assert jnp.allclose(out2, ref2, atol=1e-4, rtol=1e-4), \
        float(jnp.max(jnp.abs(out2 - ref2)))

    print("KERNEL_OK")
</pallas_src>

<mosaic_0001>
module attributes {stable_mosaic.version = 11 : i64} {
  func.func @_mlp_kernel(%arg0: i32, %arg1: memref<256x16xf32, #tpu.memory_space<vmem>>, %arg2: memref<272x128xbf16, #tpu.memory_space<vmem>>, %arg3: memref<8x128xf32, #tpu.memory_space<vmem>>, %arg4: memref<256x128xf32, #tpu.memory_space<vmem>>) attributes {dimension_semantics = [#tpu.dimension_semantics<parallel>], iteration_bounds = array<i64: 2>, scalar_prefetch = 0 : i64, scratch_operands = 0 : i64, tpu.core_type = #tpu.core_type<tc>, window_params = [{transform_indices = @transform_0, window_bounds = array<i64: 256, 16>}, {pipeline_mode = #tpu.pipeline_mode<synchronous>, transform_indices = @transform_1, window_bounds = array<i64: 272, 128>}, {pipeline_mode = #tpu.pipeline_mode<synchronous>, transform_indices = @transform_2, window_bounds = array<i64: 8, 128>}, {transform_indices = @transform_3, window_bounds = array<i64: 256, 128>}]} {
    %c0 = arith.constant 0 : index
    %c0_0 = arith.constant 0 : index
    %0 = vector.load %arg1[%c0, %c0_0] : memref<256x16xf32, #tpu.memory_space<vmem>>, vector<256x16xf32>
    %c0_1 = arith.constant 0 : index
    %c0_2 = arith.constant 0 : index
    %1 = vector.load %arg2[%c0_1, %c0_2] : memref<272x128xbf16, #tpu.memory_space<vmem>>, vector<16x128xbf16>
    %c16 = arith.constant 16 : index
    %c0_3 = arith.constant 0 : index
    %2 = vector.load %arg2[%c16, %c0_3] : memref<272x128xbf16, #tpu.memory_space<vmem>>, vector<128x128xbf16>
    %c144 = arith.constant 144 : index
    %c0_4 = arith.constant 0 : index
    %3 = vector.load %arg2[%c144, %c0_4] : memref<272x128xbf16, #tpu.memory_space<vmem>>, vector<128x128xbf16>
    %c0_5 = arith.constant 0 : index
    %c0_6 = arith.constant 0 : index
    %4 = vector.load %arg3[%c0_5, %c0_6] : memref<8x128xf32, #tpu.memory_space<vmem>>, vector<1x128xf32>
    %c1 = arith.constant 1 : index
    %c0_7 = arith.constant 0 : index
    %5 = vector.load %arg3[%c1, %c0_7] : memref<8x128xf32, #tpu.memory_space<vmem>>, vector<1x128xf32>
    %c2 = arith.constant 2 : index
    %c0_8 = arith.constant 0 : index
    %6 = vector.load %arg3[%c2, %c0_8] : memref<8x128xf32, #tpu.memory_space<vmem>>, vector<1x128xf32>
    %c3 = arith.constant 3 : index
    %c0_9 = arith.constant 0 : index
    %7 = vector.load %arg3[%c3, %c0_9] : memref<8x128xf32, #tpu.memory_space<vmem>>, vector<1x128xf32>
    %c4 = arith.constant 4 : index
    %c0_10 = arith.constant 0 : index
    %8 = vector.load %arg3[%c4, %c0_10] : memref<8x128xf32, #tpu.memory_space<vmem>>, vector<1x128xf32>
    %9 = arith.truncf %0 : vector<256x16xf32> to vector<256x16xbf16>
    %cst = arith.constant dense<0.000000e+00> : vector<256x128xf32>
    %10 = tpu.matmul %9, %1, %cst {dimension_numbers = #tpu.dot_dimension_numbers<[1], [0], [0], [1], [0, 0, 1, 1], [], []>} : vector<256x16xbf16>, vector<16x128xbf16>, vector<256x128xf32> -> vector<256x128xf32>
    %11 = vector.broadcast %5 : vector<1x128xf32> to vector<256x128xf32>
    %12 = arith.addf %10, %11 : vector<256x128xf32>
    %cst_11 = arith.constant 0.000000e+00 : f32
    %13 = vector.broadcast %cst_11 : f32 to vector<256x128xf32>
    %14 = arith.maximumf %12, %13 : vector<256x128xf32>
    %15 = arith.truncf %14 : vector<256x128xf32> to vector<256x128xbf16>
    %cst_12 = arith.constant dense<0.000000e+00> : vector<256x128xf32>
    %16 = tpu.matmul %15, %2, %cst_12 {dimension_numbers = #tpu.dot_dimension_numbers<[1], [0], [0], [1], [0, 0, 1, 1], [], []>} : vector<256x128xbf16>, vector<128x128xbf16>, vector<256x128xf32> -> vector<256x128xf32>
    %17 = vector.broadcast %6 : vector<1x128xf32> to vector<256x128xf32>
    %18 = arith.addf %16, %17 : vector<256x128xf32>
    %cst_13 = arith.constant 0.000000e+00 : f32
    %19 = vector.broadcast %cst_13 : f32 to vector<256x128xf32>
    %20 = arith.maximumf %18, %19 : vector<256x128xf32>
    %21 = arith.truncf %20 : vector<256x128xf32> to vector<256x128xbf16>
    %cst_14 = arith.constant dense<0.000000e+00> : vector<256x128xf32>
    %22 = tpu.matmul %21, %3, %cst_14 {dimension_numbers = #tpu.dot_dimension_numbers<[1], [0], [0], [1], [0, 0, 1, 1], [], []>} : vector<256x128xbf16>, vector<128x128xbf16>, vector<256x128xf32> -> vector<256x128xf32>
    %23 = vector.broadcast %7 : vector<1x128xf32> to vector<256x128xf32>
    %24 = arith.addf %22, %23 : vector<256x128xf32>
    %cst_15 = arith.constant 0.000000e+00 : f32
    %25 = vector.broadcast %cst_15 : f32 to vector<256x128xf32>
    %26 = arith.maximumf %24, %25 : vector<256x128xf32>
    %27 = vector.broadcast %4 : vector<1x128xf32> to vector<256x128xf32>
    %28 = arith.mulf %26, %27 : vector<256x128xf32>
    %cst_16 = arith.constant dense<0.000000e+00> : vector<256xf32>
    %29 = vector.multi_reduction <add>, %28, %cst_16 [1] : vector<256x128xf32> to vector<256xf32>
    %30 = vector.shape_cast %29 : vector<256xf32> to vector<256x1xf32>
    %31 = vector.shape_cast %30 : vector<256x1xf32> to vector<256x1xf32>
    %32 = vector.broadcast %31 : vector<256x1xf32> to vector<256x128xf32>
    %33 = vector.broadcast %8 : vector<1x128xf32> to vector<256x128xf32>
    %34 = arith.addf %32, %33 : vector<256x128xf32>
    %c0_17 = arith.constant 0 : index
    %c0_18 = arith.constant 0 : index
    %35 = vector.load %arg4[%c0_17, %c0_18] : memref<256x128xf32, #tpu.memory_space<vmem>>, vector<256x128xf32>
    tpu.vector_store %arg4[%c0_17, %c0_18], %34 {strides = array<i32>} : memref<256x128xf32, #tpu.memory_space<vmem>>, vector<256x128xf32>,
    return
  }
  func.func @transform_0(%arg0: i32) -> (i32, i32) {
    %c0_i32 = arith.constant 0 : i32
    %c0_i32_0 = arith.constant 0 : i32
    return %arg0, %c0_i32 : i32, i32
  }
  func.func @transform_1(%arg0: i32) -> (i32, i32) {
    %c0_i32 = arith.constant 0 : i32
    %c0_i32_0 = arith.constant 0 : i32
    %c0_i32_1 = arith.constant 0 : i32
    return %c0_i32, %c0_i32_0 : i32, i32
  }
  func.func @transform_2(%arg0: i32) -> (i32, i32) {
    %c0_i32 = arith.constant 0 : i32
    %c0_i32_0 = arith.constant 0 : i32
    %c0_i32_1 = arith.constant 0 : i32
    return %c0_i32, %c0_i32_0 : i32, i32
  }
  func.func @transform_3(%arg0: i32) -> (i32, i32) {
    %c0_i32 = arith.constant 0 : i32
    %c0_i32_0 = arith.constant 0 : i32
    return %arg0, %c0_i32 : i32, i32
  }
}

</mosaic_0001>

<bundles_post_ra>
// kernel: tpu_custom_call.1
= control target key start
LH: loop header
LB: loop body
LE: loop exit
PB: predicated region body
PF: predicated region fallthrough
CT: control target
= control target key end

     0   :  { %8 = vsyncpa [#allocation3], 0  ;;  %s2104_s0 = inlined_call_operand.vmem [shape: f32[512,16], index: 0, kind: input, shape index: {}]   ;;  %s2105_s1 = inlined_call_operand.vmem [shape: bf16[272,128], index: 1, kind: input, shape index: {}]   ;;  %s2106_s2 = inlined_call_operand.vmem [shape: f32[8,128], index: 2, kind: input, shape index: {}]   ;;  %s2107_s3 = inlined_call_operand.hbm [shape: f32[512,128], index: 3, kind: output, shape index: {}]  }
   0x1   :  { %10 = vsyncpa [#allocation3 + $0x1], 0  ;;  %s1671_s12 = smov 0   ;;  %s1673_s13 = smov 0  }
   0x2   :  { %s1675_s14 = smov 0   ;;  %s1677_s15 = smov 0  }
   0x3 LB: > { %s1692_s16 = sadd.s32 4294967295, %s1646_s15   ;;  %s1278_s17 = sadd.s32 4294967294, %s1646_s15   ;;  %s1646_s15 = sphi %s1677_s15, %s2113_s15   ;;  %s1642_s14 = sphi %s1675_s14, %s2112_s14   ;;  %s1638_s13 = sphi %s1673_s13, %s2111_s13   ;;  %s1634_s12 = sphi %s1671_s12, %s2110_s12  }
   0x4   : > { %s1696_s18 = sadd.s32 1, %s1646_s15   ;;  %s91_s19 = sadd.s32 1, %s1642_s14 }
   0x5   : > { %s88_s20 = ssub.s32 %s1646_s15, %s1696_s18  ;;  %p101_p0 = scmp.ne.s32.totalorder %s1642_s14, %s1638_s13 }
   0x6   : > { %p89_p1 = scmp.eq.s32.totalorder %s88_s20, 0  ;;  %p102_p2 = scmp.eq.s32.totalorder %s1692_s16, 1 }
   0x7   : > { %p107_p3 = scmp.ne.s32.totalorder %s1638_s13, %s1634_s12  ;;  %p108_p4 = scmp.eq.s32.totalorder %s1278_s17, 1 }
   0x8   : > { %s1707_s21 = scalar_select %p89_p1, %s1642_s14, %s91_s19  }
   0x9   : > { %p1709_p5 = por %p102_p2, %p101_p0  ;;  %p1713_p6 = por %p108_p4, %p107_p3 }
   0xa   : > { %p1281_p7 = scmp.ge.s32.totalorder %s1646_s15, 1  ;;  %p141_p8 = scmp.lt.s32.totalorder %s1646_s15, 3 }
   0xc   : > { %p142_p9 = pnand %p1281_p7, %p141_p8 }
   0xd   : > { %v1567_v0 = vld [vmem:[%s2105_s1] sm:$0xff] (!%p142_p9)   ;;  %s1283_s26 = sshll.u32 (!%p142_p9), %s1692_s16, 5  ;;  %v1568_v1 = vld [vmem:[%s2105_s1 + $0x8] sm:$0xff] (!%p142_p9)   ;;  %vm270_vm0 = vcmask (!%p142_p9), 130048   ;;  %v1569_v23 = vld [vmem:[%s2105_s1 + $0x10] sm:$0xff] (!%p142_p9)   ;;  %s162_s8 = sand.u32 (!%p142_p9), 1, %s1638_s13  }
   0xe   : > { %145 = sbr.rel (%p142_p9) target bundleno = 912 (0x390), region = 32  ;;  %p166_p10 = scmp.lt.s32.totalorder (!%p142_p9), %s1283_s26, 63  ;;  %1394 = vmatprep.subr.bf16.mxu0 (!%p142_p9), %v1567_v0  ;;  %1524 = vmatprep.subr.bf16.mxu1 (!%p142_p9), %v1567_v0  ;;  %v1570_v28 = vld [vmem:[%s2105_s1 + $0x18] sm:$0xff] (!%p142_p9)   ;;  %v1571_v37 = vld [vmem:[%s2105_s1 + $0x20] sm:$0xff] (!%p142_p9)   ;;  %v1572_v45 = vld [vmem:[%s2105_s1 + $0x28] sm:$0xff] (!%p142_p9)  }
   0xf   : > { %1395 = vmatpush3.bf16.msra.mxu0 (!%p142_p9), %v1567_v0  ;;  %1525 = vmatpush3.bf16.msra.mxu1 (!%p142_p9), %v1567_v0  ;;  %v1573_v50 = vld [vmem:[%s2105_s1 + $0x30] sm:$0xff] (!%p142_p9)   ;;  %v1574_v55 = vld [vmem:[%s2105_s1 + $0x38] sm:$0xff] (!%p142_p9)   ;;  %v1575_v56 = vld [vmem:[%s2105_s1 + $0x40] sm:$0xff] (!%p142_p9)   ;;  %s1282_s9 = sshll.u32 (!%p142_p9), %s162_s8, 8  ;;  %s1328_s19 = sshll.u32 (!%p142_p9), %s1692_s16, 12 }
  0x10   : > { %1428 = vmatprep.subr.bf16.mxu1 (!%p142_p9), %v1568_v1  ;;  %v1576_v57 = vld [vmem:[%s2105_s1 + $0x48] sm:$0xff] (!%p142_p9)   ;;  %v1577_v58 = vld [vmem:[%s2105_s1 + $0x50] sm:$0xff] (!%p142_p9)   ;;  %v1578_v59 = vld [vmem:[%s2105_s1 + $0x58] sm:$0xff] (!%p142_p9)   ;;  %s1988_s17 = scalar_lea.vmem (!%p142_p9), [#allocation2], %s1282_s9  ;;  %s2063_s16 = scalar_lea.sflag (!%p142_p9), [#allocation3], %s162_s8 }
  0x11   : > { %1476 = vmatprep.subr.bf16.mxu0 (!%p142_p9), %v1576_v57  ;;  %v1579_v60 = vld [vmem:[%s2105_s1 + $0x60] sm:$0xff] (!%p142_p9)   ;;  %v1580_v61 = vld [vmem:[%s2105_s1 + $0x68] sm:$0xff] (!%p142_p9)   ;;  %v1581_v62 = vld [vmem:[%s2105_s1 + $0x70] sm:$0xff] (!%p142_p9)   ;;  %s1216_s20 = sshll.u32 (!%p142_p9), %s1988_s17, 4  ;;  %s1648_s28 = smov (!%p142_p9), [#allocation2]   ;;  %s2056_s20 = int_to_ptr.vmem [resolvable:$true] %s1216_s20 }
  0x12   : > { %v1821_v63 = vld [vmem:[%s2106_s2 + $0x1] ss:$0 sm:$0xff] (!%p142_p9)  ;;  %s1584_s27 = scalar_lea.vmem (!%p142_p9), %s2056_s20, 4096 }
  0x13   : > { %p1585_p11 = scmp.ne.s32.totalorder (!%p142_p9), %s2056_s20, %s1584_s27 }
  0x15   : > { %s2115_s26 = smov (!%p166_p10, %s1283_s26), 63  ;;  %p1586_p12 = pnand %p1585_p11, %p1709_p5 }
  0x16   : > { %s1284_s29 = sshll.u32 %s2115_s26, 3  ;;  %s2054_s26 = scalar_lea.hbm %s2107_s3, %s1328_s19 }
  0x17   : > { %s1729_s5 = scalar_lea.vmem %s2104_s0, %s1284_s29  ;;  %p1587_p13 = pneg %p1586_p12 }
  0x18   : > { %v173_v2 = vld [vmem:[%s1729_s5] sm:$0xff]  ;;  %v174_v3 = vld [vmem:[%s1729_s5 + $0x8] sm:$0xff]  ;;  %v175_v4 = vld [vmem:[%s1729_s5 + $0x10] sm:$0xff]  ;;  %s1588_s29 = sshll.u32 %s1648_s28, 4  ;;  %s1589_s29 = int_to_ptr.vmem [resolvable:$false] %s1588_s29 }
  0x19   : > { %v244_v5 = vpack.c.bf16 %v174_v3, %v173_v2  ;;  %v176_v6 = vld [vmem:[%s1729_s5 + $0x18] sm:$0xff]  ;;  %v177_v7 = vld [vmem:[%s1729_s5 + $0x20] sm:$0xff]  ;;  %v178_v8 = vld [vmem:[%s1729_s5 + $0x28] sm:$0xff]  ;;  %s1590_s30 = scalar_lea.vmem %s1589_s29, 8192  ;;  %p1591_p0 = scmp.lt.s32.totalorder %s2056_s20, %s1589_s29 }
  0x1a   : > { %v245_v9 = vpack.c.bf16 %v176_v6, %v175_v4  ;;  %v246_v10 = vpack.c.bf16 %v178_v8, %v177_v7  ;;  %v179_v11 = vld [vmem:[%s1729_s5 + $0x30] sm:$0xff]  ;;  %v180_v12 = vld [vmem:[%s1729_s5 + $0x38] sm:$0xff]  ;;  %v181_v13 = vld [vmem:[%s1729_s5 + $0x40] sm:$0xff]  ;;  %p1592_p1 = scmp.lt.s32.totalorder %s1590_s30, %s1584_s27 }
  0x1b   : > { %1396 = vmatprep.mubr.msk.bf16.mxu0 %vm270_vm0, %v244_v5  ;;  %v182_v14 = vld [vmem:[%s1729_s5 + $0x48] sm:$0xff]  ;;  %v189_v15 = vld [vmem:[%s1729_s5 + $0x80] sm:$0xff]  ;;  %v191_v18 = vld [vmem:[%s1729_s5 + $0x90] sm:$0xff]  ;;  %v247_v24 = vpack.c.bf16 %v180_v12, %v179_v11 }
  0x1c   : > { %1397 = vmatmul.mubr.msk.bf16.vlgmr.msra.gmra.mrb[0].mxu0 %vm270_vm0, %v245_v9  ;;  %v190_v16 = vld [vmem:[%s1729_s5 + $0x88] sm:$0xff]  ;;  %v192_v19 = vld [vmem:[%s1729_s5 + $0x98] sm:$0xff]  ;;  %v193_v20 = vld [vmem:[%s1729_s5 + $0xa0] sm:$0xff]  ;;  %v248_v26 = vpack.c.bf16 %v182_v14, %v181_v13  ;;  %p1593_p2 = por %p1592_p1, %p1591_p0 }
  0x1d   : > { %1400 = vmatprep.mubr.msk.bf16.mxu0 %vm270_vm0, %v246_v10  ;;  %v252_v17 = vpack.c.bf16 %v190_v16, %v189_v15  ;;  %v253_v21 = vpack.c.bf16 %v192_v19, %v191_v18  ;;  %v194_v22 = vld [vmem:[%s1729_s5 + $0xa8] sm:$0xff]  ;;  %v195_v27 = vld [vmem:[%s1729_s5 + $0xb0] sm:$0xff]  ;;  %v196_v29 = vld [vmem:[%s1729_s5 + $0xb8] sm:$0xff]  ;;  %1477 = vmatpush3.bf16.msra.mxu0 %v1576_v57 }
  0x1e   : > { %v254_v25 = vpack.c.bf16 %v194_v22, %v193_v20  ;;  %v197_v30 = vld [vmem:[%s1729_s5 + $0xc0] sm:$0xff]  ;;  %v198_v31 = vld [vmem:[%s1729_s5 + $0xc8] sm:$0xff]  ;;  %v183_v32 = vld [vmem:[%s1729_s5 + $0x50] sm:$0xff]  ;;  %v255_v36 = vpack.c.bf16 %v196_v29, %v195_v27  ;;  %1478 = vmatprep.subr.bf16.mxu0 %v1577_v58  ;;  %p1594_p3 = pnand %p1593_p2, %p1587_p13 }
  0x1f   : > { %1412 = vmatprep.mubr.msk.bf16.mxu1 %vm270_vm0, %v252_v17  ;;  %v184_v33 = vld [vmem:[%s1729_s5 + $0x58] sm:$0xff]  ;;  %v185_v34 = vld [vmem:[%s1729_s5 + $0x60] sm:$0xff]  ;;  %v186_v35 = vld [vmem:[%s1729_s5 + $0x68] sm:$0xff]  ;;  %v256_v38 = vpack.c.bf16 %v198_v31, %v197_v30 }
  0x20   : > { %1413 = vmatmul.mubr.msk.bf16.vlgmr.msra.gmra.mrb[0].mxu1 %vm270_vm0, %v253_v21  ;;  %v249_v39 = vpack.c.bf16 %v184_v33, %v183_v32  ;;  %v250_v40 = vpack.c.bf16 %v186_v35, %v185_v34  ;;  %v199_v41 = vld [vmem:[%s1729_s5 + $0xd0] sm:$0xff]  ;;  %v200_v42 = vld [vmem:[%s1729_s5 + $0xd8] sm:$0xff]  ;;  %v201_v43 = vld [vmem:[%s1729_s5 + $0xe0] sm:$0xff] }
  0x21   : > { %1416 = vmatprep.mubr.msk.bf16.mxu1 %vm270_vm0, %v254_v25  ;;  %1429 = vmatpush3.bf16.msra.mxu1 %v1568_v1  ;;  %v202_v44 = vld [vmem:[%s1729_s5 + $0xe8] sm:$0xff]  ;;  %v187_v46 = vld [vmem:[%s1729_s5 + $0x70] sm:$0xff]  ;;  %v188_v47 = vld [vmem:[%s1729_s5 + $0x78] sm:$0xff]  ;;  %v257_v48 = vpack.c.bf16 %v200_v42, %v199_v41 }
  0x22   : > { %1430 = vmatprep.subr.bf16.mxu1 %v1569_v23  ;;  %v258_v49 = vpack.c.bf16 %v202_v44, %v201_v43  ;;  %v251_v51 = vpack.c.bf16 %v188_v47, %v187_v46  ;;  %v203_v52 = vld [vmem:[%s1729_s5 + $0xf0] sm:$0xff]  ;;  %v204_v53 = vld [vmem:[%s1729_s5 + $0xf8] sm:$0xff]  ;;  %1479 = vmatpush3.bf16.msra.mxu0 %v1577_v58 }
  0x23   : > { %v259_v54 = vpack.c.bf16 %v204_v53, %v203_v52  ;;  %1480 = vmatprep.subr.bf16.mxu0 %v1578_v59 }
  0x24   : > { %1401 = vmatmul.mubr.msk.bf16.gmra.mrb[4].mxu0 %vm270_vm0, %v247_v24 }
  0x25   : > { %1404 = vmatprep.mubr.msk.bf16.mxu0 %vm270_vm0, %v248_v26  ;;  %1431 = vmatpush3.bf16.msra.mxu1 %v1569_v23 }
  0x26   : > { %1432 = vmatprep.subr.bf16.mxu1 %v1570_v28  ;;  %1481 = vmatpush3.bf16.msra.mxu0 %v1578_v59 }
  0x27   : > { %1482 = vmatprep.subr.bf16.mxu0 %v1579_v60 }
  0x28   : > { %1417 = vmatmul.mubr.msk.bf16.gmra.mrb[4].mxu1 %vm270_vm0, %v255_v36 }
  0x29   : > { %1420 = vmatprep.mubr.msk.bf16.mxu1 %vm270_vm0, %v256_v38  ;;  %1433 = vmatpush3.bf16.msra.mxu1 %v1570_v28 }
  0x2a   : > { %1434 = vmatprep.subr.bf16.mxu1 %v1571_v37  ;;  %1483 = vmatpush3.bf16.msra.mxu0 %v1579_v60 }
  0x2b   : > { %1484 = vmatprep.subr.bf16.mxu0 %v1580_v61 }
  0x2c   : > { %1405 = vmatmul.mubr.msk.bf16.gmra.mrb[8].mxu0 %vm270_vm0, %v249_v39 }
  0x2d   : > { %1408 = vmatprep.mubr.msk.bf16.mxu0 %vm270_vm0, %v250_v40  ;;  %1435 = vmatpush3.bf16.msra.mxu1 %v1571_v37 }
  0x2e   : > { %1436 = vmatprep.subr.bf16.mxu1 %v1572_v45  ;;  %1485 = vmatpush3.bf16.msra.mxu0 %v1580_v61 }
  0x2f   : > { %1486 = vmatprep.subr.bf16.mxu0 %v1581_v62 }
  0x30   : > { %1421 = vmatmul.mubr.msk.bf16.gmra.mrb[8].mxu1 %vm270_vm0, %v257_v48 }
  0x31   : > { %1424 = vmatprep.mubr.msk.bf16.mxu1 %vm270_vm0, %v258_v49  ;;  %1437 = vmatpush3.bf16.msra.mxu1 %v1572_v45 }
  0x32   : > { %1438 = vmatprep.subr.bf16.mxu1 %v1573_v50  ;;  %1487 = vmatpush3.bf16.msra.mxu0 %v1581_v62 }
  0x34   : > { %1409 = vmatmul.mubr.msk.bf16.gmra.mrb[12].mxu0 %vm270_vm0, %v251_v51 }
  0x35   : > { %1439 = vmatpush3.bf16.msra.mxu1 %v1573_v50 }
  0x36   : > { %1440 = vmatprep.subr.bf16.mxu1 %v1574_v55 }
  0x38   : > { %1425 = vmatmul.mubr.msk.bf16.gmra.mrb[12].mxu1 %vm270_vm0, %v259_v54 }
  0x39   : > { %1441 = vmatpush3.bf16.msra.mxu1 %v1574_v55 }
  0x3a   : > { %1442 = vmatprep.subr.bf16.mxu1 %v1575_v56 }
  0x3d   : > { %1443 = vmatpush3.bf16.msra.mxu1 %v1575_v56 }
  0xef   : > { %v1398_v0 = vpop.f32.mrb[0].mxu0 }
  0xf0   : > { %v362_v1 = vadd.f32 %v1398_v0, %v1821_v63  ;;  %v353_v2 = vpop.f32.mrb[1].mxu0 }
  0xf1   : > { %v354_v3 = vadd.f32 %v1821_v63, %v353_v2  ;;  %v1399_v4 = vpop.f32.mrb[2].mxu0 }
  0xf2   : > { %v365_v5 = vadd.f32 %v1399_v4, %v1821_v63  ;;  %v356_v6 = vpop.f32.mrb[3].mxu0  ;;  %v482_v8 = vmax.f32 %v362_v1, 0.0 }
  0xf3   : > { %v357_v7 = vadd.f32 %v1821_v63, %v356_v6  ;;  %v1414_v10 = vpop.f32.mrb[0].mxu1  ;;  %v480_v11 = vmax.f32 %v354_v3, 0.0 }
  0xf4   : > { %v483_v9 = vmax.f32 %v365_v5, 0.0  ;;  %v426_v13 = vadd.f32 %v1414_v10, %v1821_v63  ;;  %v417_v14 = vpop.f32.mrb[1].mxu1 }
  0xf5   : > { %v481_v12 = vmax.f32 %v357_v7, 0.0  ;;  %v418_v16 = vadd.f32 %v1821_v63, %v417_v14  ;;  %v1415_v17 = vpop.f32.mrb[2].mxu1 }
  0xf6   : > { %v513_v15 = vpack.c.bf16 %v483_v9, %v482_v8  ;;  %v498_v20 = vmax.f32 %v426_v13, 0.0  ;;  %v429_v21 = vadd.f32 %v1415_v17, %v1821_v63  ;;  %v420_v22 = vpop.f32.mrb[3].mxu1 }
  0xf7   : > { %v512_v18 = vpack.c.bf16 %v481_v12, %v480_v11  ;;  %v1402_v19 = vpop.f32.mrb[4].mxu0  ;;  %v496_v25 = vmax.f32 %v418_v16, 0.0  ;;  %v421_v26 = vadd.f32 %v1821_v63, %v420_v22 }
  0xf8   : > { %v378_v23 = vadd.f32 %v1402_v19, %v1821_v63  ;;  %v369_v24 = vpop.f32.mrb[5].mxu0  ;;  %v499_v29 = vmax.f32 %v429_v21, 0.0 }
  0xf9   : > { %v370_v27 = vadd.f32 %v1821_v63, %v369_v24  ;;  %v1403_v28 = vpop.f32.mrb[6].mxu0  ;;  %1444 = vmatprep.mubr.bf16.mxu1 %v512_v18  ;;  %v497_v32 = vmax.f32 %v421_v26, 0.0 }
  0xfa   : > { %v381_v30 = vadd.f32 %v1403_v28, %v1821_v63  ;;  %v372_v31 = vpop.f32.mrb[7].mxu0  ;;  %1445 = vmatmul.mubr.bf16.vlgmr.msra.gmra.mrb[16].mxu1 %v513_v15  ;;  %v1835_v34 = vpack.c.bf16 %v499_v29, %v498_v20  ;;  %v486_v35 = vmax.f32 %v378_v23, 0.0 }
  0xfb   : > { %v373_v33 = vadd.f32 %v1821_v63, %v372_v31  ;;  %v1837_v37 = vpack.c.bf16 %v497_v32, %v496_v25  ;;  %v1418_v38 = vpop.f32.mrb[4].mxu1  ;;  %v484_v39 = vmax.f32 %v370_v27, 0.0 }
  0xfc   : > { %v487_v36 = vmax.f32 %v381_v30, 0.0  ;;  %v442_v41 = vadd.f32 %v1418_v38, %v1821_v63  ;;  %v433_v42 = vpop.f32.mrb[5].mxu1 }
  0xfd   : > { %v485_v40 = vmax.f32 %v373_v33, 0.0  ;;  %v434_v44 = vadd.f32 %v1821_v63, %v433_v42  ;;  %v1419_v45 = vpop.f32.mrb[6].mxu1 }
  0xfe   : > { %v515_v43 = vpack.c.bf16 %v487_v36, %v486_v35  ;;  %v502_v48 = vmax.f32 %v442_v41, 0.0  ;;  %v445_v49 = vadd.f32 %v1419_v45, %v1821_v63  ;;  %v436_v50 = vpop.f32.mrb[7].mxu1 }
  0xff   : > { %v514_v46 = vpack.c.bf16 %v485_v40, %v484_v39  ;;  %v1406_v47 = vpop.f32.mrb[8].mxu0  ;;  %v500_v53 = vmax.f32 %v434_v44, 0.0  ;;  %v437_v54 = vadd.f32 %v1821_v63, %v436_v50 }
 0x100   : > { %v394_v51 = vadd.f32 %v1406_v47, %v1821_v63  ;;  %v385_v52 = vpop.f32.mrb[9].mxu0  ;;  %v503_v57 = vmax.f32 %v445_v49, 0.0 }
 0x101   : > { %v386_v55 = vadd.f32 %v1821_v63, %v385_v52  ;;  %v1407_v56 = vpop.f32.mrb[10].mxu0  ;;  %1448 = vmatprep.mubr.bf16.mxu1 %v514_v46  ;;  %v501_v60 = vmax.f32 %v437_v54, 0.0 }
 0x102   : > { %v397_v58 = vadd.f32 %v1407_v56, %v1821_v63  ;;  %v388_v59 = vpop.f32.mrb[11].mxu0  ;;  %1449 = vmatmul.mubr.bf16.gmra.mrb[20].mxu1 %v515_v43  ;;  %v523_v62 = vpack.c.bf16 %v503_v57, %v502_v48  ;;  %v490_v0 = vmax.f32 %v394_v51, 0.0 }
 0x103   : > { %v389_v61 = vadd.f32 %v1821_v63, %v388_v59  ;;  %v522_v2 = vpack.c.bf16 %v501_v60, %v500_v53  ;;  %v1422_v3 = vpop.f32.mrb[8].mxu1  ;;  %v488_v4 = vmax.f32 %v386_v55, 0.0 }
 0x104   : > { %v491_v1 = vmax.f32 %v397_v58, 0.0  ;;  %v458_v6 = vadd.f32 %v1422_v3, %v1821_v63  ;;  %v449_v7 = vpop.f32.mrb[9].mxu1 }
 0x105   : > { %v489_v5 = vmax.f32 %v389_v61, 0.0  ;;  %v450_v9 = vadd.f32 %v1821_v63, %v449_v7  ;;  %v1423_v10 = vpop.f32.mrb[10].mxu1 }
 0x106   : > { %v517_v8 = vpack.c.bf16 %v491_v1, %v490_v0  ;;  %v506_v13 = vmax.f32 %v458_v6, 0.0  ;;  %v461_v14 = vadd.f32 %v1423_v10, %v1821_v63  ;;  %v452_v15 = vpop.f32.mrb[11].mxu1 }
 0x107   : > { %v516_v11 = vpack.c.bf16 %v489_v5, %v488_v4  ;;  %v1410_v12 = vpop.f32.mrb[12].mxu0  ;;  %v504_v18 = vmax.f32 %v450_v9, 0.0  ;;  %v453_v19 = vadd.f32 %v1821_v63, %v452_v15 }
 0x108   : > { %v410_v16 = vadd.f32 %v1410_v12, %v1821_v63  ;;  %v401_v17 = vpop.f32.mrb[13].mxu0  ;;  %v507_v22 = vmax.f32 %v461_v14, 0.0 }
 0x109   : > { %v402_v20 = vadd.f32 %v1821_v63, %v401_v17  ;;  %v1411_v21 = vpop.f32.mrb[14].mxu0  ;;  %1452 = vmatprep.mubr.bf16.mxu1 %v516_v11  ;;  %v505_v25 = vmax.f32 %v453_v19, 0.0 }
 0x10a   : > { %v413_v23 = vadd.f32 %v1411_v21, %v1821_v63  ;;  %v404_v24 = vpop.f32.mrb[15].mxu0  ;;  %1453 = vmatmul.mubr.bf16.gmra.mrb[24].mxu1 %v517_v8  ;;  %v525_v27 = vpack.c.bf16 %v507_v22, %v506_v13  ;;  %v494_v28 = vmax.f32 %v410_v16, 0.0 }
 0x10b   : > { %v405_v26 = vadd.f32 %v1821_v63, %v404_v24  ;;  %v524_v30 = vpack.c.bf16 %v505_v25, %v504_v18  ;;  %v1426_v31 = vpop.f32.mrb[12].mxu1  ;;  %v492_v32 = vmax.f32 %v402_v20, 0.0 }
 0x10c   : > { %v495_v29 = vmax.f32 %v413_v23, 0.0  ;;  %v474_v35 = vadd.f32 %v1426_v31, %v1821_v63  ;;  %v465_v36 = vpop.f32.mrb[13].mxu1 }
 0x10d   : > { %v493_v33 = vmax.f32 %v405_v26, 0.0  ;;  %v466_v39 = vadd.f32 %v1821_v63, %v465_v36  ;;  %v1427_v40 = vpop.f32.mrb[14].mxu1 }
 0x10e   : > { %v519_v38 = vpack.c.bf16 %v495_v29, %v494_v28  ;;  %v510_v42 = vmax.f32 %v474_v35, 0.0  ;;  %v477_v43 = vadd.f32 %v1427_v40, %v1821_v63  ;;  %v468_v44 = vpop.f32.mrb[15].mxu1 }
 0x10f   : > { %v518_v41 = vpack.c.bf16 %v493_v33, %v492_v32  ;;  %v508_v45 = vmax.f32 %v466_v39, 0.0  ;;  %v469_v46 = vadd.f32 %v1821_v63, %v468_v44  ;;  %v1582_v63 = vld [vmem:[%s2105_s1 + $0x78] sm:$0xff]  }
 0x110   : > { %v511_v47 = vmax.f32 %v477_v43, 0.0  ;;  %1488 = vmatprep.subr.bf16.mxu0 %v1582_v63 }
 0x111   : > { %1456 = vmatprep.mubr.bf16.mxu1 %v518_v41  ;;  %v509_v48 = vmax.f32 %v469_v46, 0.0  ;;  %1489 = vmatpush3.bf16.msra.mxu0 %v1582_v63 }
 0x112   : > { %1457 = vmatmul.mubr.bf16.gmra.mrb[28].mxu1 %v519_v38  ;;  %v527_v49 = vpack.c.bf16 %v511_v47, %v510_v42 }
 0x113   : > { %1460 = vmatprep.mubr.bf16.mxu1 %v1837_v37  ;;  %v526_v50 = vpack.c.bf16 %v509_v48, %v508_v45  ;;  %v1583_v37 = vld [vmem:[%s2105_s1 + $0x80] sm:$0xff]  }
 0x114   : > { %1490 = vmatprep.subr.bf16.mxu0 %v1583_v37 }
 0x115   : > { %1491 = vmatpush3.bf16.msra.mxu0 %v1583_v37 }
 0x11a   : > { %1461 = vmatmul.mubr.bf16.gmra.mrb[32].mxu1 %v1835_v34  ;;  %v1870_v34 = vld [vmem:[%s2106_s2 + $0x2] ss:$0 sm:$0xff] }
 0x11b   : > { %1464 = vmatprep.mubr.bf16.mxu1 %v522_v2 }
 0x122   : > { %1465 = vmatmul.mubr.bf16.gmra.mrb[36].mxu1 %v523_v62 }
 0x123   : > { %1468 = vmatprep.mubr.bf16.mxu1 %v524_v30 }
 0x12a   : > { %1469 = vmatmul.mubr.bf16.gmra.mrb[40].mxu1 %v525_v27 }
 0x12b   : > { %1472 = vmatprep.mubr.bf16.mxu1 %v526_v50 }
 0x132   : > { %1473 = vmatmul.mubr.bf16.gmra.mrb[44].mxu1 %v527_v49 }
 0x1cd   : > { %v1446_v51 = vpop.f32.mrb[16].mxu1 }
 0x1ce   : > { %v623_v52 = vadd.f32 %v1446_v51, %v1870_v34  ;;  %v614_v53 = vpop.f32.mrb[17].mxu1 }
 0x1cf   : > { %v615_v54 = vadd.f32 %v1870_v34, %v614_v53  ;;  %v1447_v55 = vpop.f32.mrb[18].mxu1 }
 0x1d0   : > { %v626_v56 = vadd.f32 %v1447_v55, %v1870_v34  ;;  %v617_v57 = vpop.f32.mrb[19].mxu1  ;;  %v743_v59 = vmax.f32 %v623_v52, 0.0 }
 0x1d1   : > { %v618_v58 = vadd.f32 %v1870_v34, %v617_v57  ;;  %v741_v61 = vmax.f32 %v615_v54, 0.0 }
 0x1d2   : > { %v744_v60 = vmax.f32 %v626_v56, 0.0 }
 0x1d3   : > { %v742_v62 = vmax.f32 %v618_v58, 0.0 }
 0x1d4   : > { %v774_v0 = vpack.c.bf16 %v744_v60, %v743_v59 }
 0x1d5   : > { %v773_v1 = vpack.c.bf16 %v742_v62, %v741_v61  ;;  %v1450_v2 = vpop.f32.mrb[20].mxu1 }
 0x1d6   : > { %v639_v3 = vadd.f32 %v1450_v2, %v1870_v34  ;;  %v630_v4 = vpop.f32.mrb[21].mxu1 }
 0x1d7   : > { %v631_v5 = vadd.f32 %v1870_v34, %v630_v4  ;;  %v1451_v6 = vpop.f32.mrb[22].mxu1  ;;  %1492 = vmatprep.mubr.bf16.mxu0 %v773_v1 }
 0x1d8   : > { %v642_v7 = vadd.f32 %v1451_v6, %v1870_v34  ;;  %v633_v8 = vpop.f32.mrb[23].mxu1  ;;  %1493 = vmatmul.mubr.bf16.vlgmr.msra.gmra.mrb[16].mxu0 %v774_v0  ;;  %v747_v10 = vmax.f32 %v639_v3, 0.0 }
 0x1d9   : > { %v634_v9 = vadd.f32 %v1870_v34, %v633_v8  ;;  %v745_v12 = vmax.f32 %v631_v5, 0.0 }
 0x1da   : > { %v748_v11 = vmax.f32 %v642_v7, 0.0 }
 0x1db   : > { %v746_v13 = vmax.f32 %v634_v9, 0.0 }
 0x1dc   : > { %v776_v14 = vpack.c.bf16 %v748_v11, %v747_v10 }
 0x1dd   : > { %v775_v15 = vpack.c.bf16 %v746_v13, %v745_v12  ;;  %v1454_v16 = vpop.f32.mrb[24].mxu1 }
 0x1de   : > { %v655_v17 = vadd.f32 %v1454_v16, %v1870_v34  ;;  %v646_v18 = vpop.f32.mrb[25].mxu1 }
 0x1df   : > { %v647_v19 = vadd.f32 %v1870_v34, %v646_v18  ;;  %v1455_v20 = vpop.f32.mrb[26].mxu1  ;;  %1496 = vmatprep.mubr.bf16.mxu0 %v775_v15 }
 0x1e0   : > { %v658_v21 = vadd.f32 %v1455_v20, %v1870_v34  ;;  %v649_v22 = vpop.f32.mrb[27].mxu1  ;;  %1497 = vmatmul.mubr.bf16.gmra.mrb[20].mxu0 %v776_v14  ;;  %v751_v24 = vmax.f32 %v655_v17, 0.0 }
 0x1e1   : > { %v650_v23 = vadd.f32 %v1870_v34, %v649_v22  ;;  %v749_v26 = vmax.f32 %v647_v19, 0.0 }
 0x1e2   : > { %v752_v25 = vmax.f32 %v658_v21, 0.0 }
 0x1e3   : > { %v750_v27 = vmax.f32 %v650_v23, 0.0 }
 0x1e4   : > { %v778_v28 = vpack.c.bf16 %v752_v25, %v751_v24 }
 0x1e5   : > { %v777_v29 = vpack.c.bf16 %v750_v27, %v749_v26  ;;  %v1458_v30 = vpop.f32.mrb[28].mxu1 }
 0x1e6   : > { %v671_v31 = vadd.f32 %v1458_v30, %v1870_v34  ;;  %v662_v32 = vpop.f32.mrb[29].mxu1 }
 0x1e7   : > { %v663_v33 = vadd.f32 %v1870_v34, %v662_v32  ;;  %v1459_v35 = vpop.f32.mrb[30].mxu1  ;;  %1500 = vmatprep.mubr.bf16.mxu0 %v777_v29 }
 0x1e8   : > { %v674_v36 = vadd.f32 %v1459_v35, %v1870_v34  ;;  %v665_v38 = vpop.f32.mrb[31].mxu1  ;;  %1501 = vmatmul.mubr.bf16.gmra.mrb[24].mxu0 %v778_v28  ;;  %v755_v40 = vmax.f32 %v671_v31, 0.0 }
 0x1e9   : > { %v666_v39 = vadd.f32 %v1870_v34, %v665_v38  ;;  %v753_v42 = vmax.f32 %v663_v33, 0.0 }
 0x1ea   : > { %v756_v41 = vmax.f32 %v674_v36, 0.0 }
 0x1eb   : > { %v754_v43 = vmax.f32 %v666_v39, 0.0  ;;  %v1907_v39 = vld [vmem:[%s2106_s2 + $0x3] ss:$0 sm:$0xff] }
 0x1ec   : > { %v780_v44 = vpack.c.bf16 %v756_v41, %v755_v40 }
 0x1ed   : > { %v779_v45 = vpack.c.bf16 %v754_v43, %v753_v42  ;;  %v1462_v46 = vpop.f32.mrb[32].mxu1 }
 0x1ee   : > { %v687_v47 = vadd.f32 %v1462_v46, %v1870_v34  ;;  %v678_v48 = vpop.f32.mrb[33].mxu1 }
 0x1ef   : > { %v679_v49 = vadd.f32 %v1870_v34, %v678_v48  ;;  %v1463_v50 = vpop.f32.mrb[34].mxu1  ;;  %1504 = vmatprep.mubr.bf16.mxu0 %v779_v45 }
 0x1f0   : > { %v690_v63 = vadd.f32 %v1463_v50, %v1870_v34  ;;  %v681_v37 = vpop.f32.mrb[35].mxu1  ;;  %1505 = vmatmul.mubr.bf16.gmra.mrb[28].mxu0 %v780_v44  ;;  %v759_v52 = vmax.f32 %v687_v47, 0.0  ;;  %v1914_v44 = vld [vmem:[%s2106_s2] ss:$0 sm:$0xff] }
 0x1f1   : > { %v682_v51 = vadd.f32 %v1870_v34, %v681_v37  ;;  %v757_v54 = vmax.f32 %v679_v49, 0.0 }
 0x1f2   : > { %v760_v53 = vmax.f32 %v690_v63, 0.0 }
 0x1f3   : > { %v758_v55 = vmax.f32 %v682_v51, 0.0 }
 0x1f4   : > { %v782_v56 = vpack.c.bf16 %v760_v53, %v759_v52 }
 0x1f5   : > { %v781_v57 = vpack.c.bf16 %v758_v55, %v757_v54  ;;  %v1466_v58 = vpop.f32.mrb[36].mxu1 }
 0x1f6   : > { %v703_v59 = vadd.f32 %v1466_v58, %v1870_v34  ;;  %v694_v60 = vpop.f32.mrb[37].mxu1 }
 0x1f7   : > { %v695_v61 = vadd.f32 %v1870_v34, %v694_v60  ;;  %v1467_v62 = vpop.f32.mrb[38].mxu1  ;;  %1508 = vmatprep.mubr.bf16.mxu0 %v781_v57 }
 0x1f8   : > { %v706_v0 = vadd.f32 %v1467_v62, %v1870_v34  ;;  %v697_v1 = vpop.f32.mrb[39].mxu1  ;;  %1509 = vmatmul.mubr.bf16.gmra.mrb[32].mxu0 %v782_v56  ;;  %v763_v3 = vmax.f32 %v703_v59, 0.0 }
 0x1f9   : > { %v698_v2 = vadd.f32 %v1870_v34, %v697_v1  ;;  %v761_v5 = vmax.f32 %v695_v61, 0.0 }
 0x1fa   : > { %v764_v4 = vmax.f32 %v706_v0, 0.0 }
 0x1fb   : > { %v762_v6 = vmax.f32 %v698_v2, 0.0 }
 0x1fc   : > { %v784_v7 = vpack.c.bf16 %v764_v4, %v763_v3 }
 0x1fd   : > { %v783_v8 = vpack.c.bf16 %v762_v6, %v761_v5  ;;  %v1470_v9 = vpop.f32.mrb[40].mxu1 }
 0x1fe   : > { %v719_v10 = vadd.f32 %v1470_v9, %v1870_v34  ;;  %v710_v11 = vpop.f32.mrb[41].mxu1 }
 0x1ff   : > { %v711_v12 = vadd.f32 %v1870_v34, %v710_v11  ;;  %v1471_v13 = vpop.f32.mrb[42].mxu1  ;;  %1512 = vmatprep.mubr.bf16.mxu0 %v783_v8 }
 0x200   : > { %v722_v14 = vadd.f32 %v1471_v13, %v1870_v34  ;;  %v713_v15 = vpop.f32.mrb[43].mxu1  ;;  %1513 = vmatmul.mubr.bf16.gmra.mrb[36].mxu0 %v784_v7  ;;  %v767_v17 = vmax.f32 %v719_v10, 0.0 }
 0x201   : > { %v714_v16 = vadd.f32 %v1870_v34, %v713_v15  ;;  %v765_v19 = vmax.f32 %v711_v12, 0.0 }
 0x202   : > { %v768_v18 = vmax.f32 %v722_v14, 0.0 }
 0x203   : > { %v766_v20 = vmax.f32 %v714_v16, 0.0 }
 0x204   : > { %v786_v21 = vpack.c.bf16 %v768_v18, %v767_v17 }
 0x205   : > { %v785_v22 = vpack.c.bf16 %v766_v20, %v765_v19  ;;  %v1474_v23 = vpop.f32.mrb[44].mxu1 }
 0x206   : > { %v735_v24 = vadd.f32 %v1474_v23, %v1870_v34  ;;  %v726_v25 = vpop.f32.mrb[45].mxu1 }
 0x207   : > { %v727_v26 = vadd.f32 %v1870_v34, %v726_v25  ;;  %v1475_v27 = vpop.f32.mrb[46].mxu1  ;;  %1516 = vmatprep.mubr.bf16.mxu0 %v785_v22 }
 0x208   : > { %v738_v28 = vadd.f32 %v1475_v27, %v1870_v34  ;;  %v729_v29 = vpop.f32.mrb[47].mxu1  ;;  %1517 = vmatmul.mubr.bf16.gmra.mrb[40].mxu0 %v786_v21  ;;  %v771_v31 = vmax.f32 %v735_v24, 0.0 }
 0x209   : > { %v730_v30 = vadd.f32 %v1870_v34, %v729_v29  ;;  %v769_v33 = vmax.f32 %v727_v26, 0.0 }
 0x20a   : > { %v772_v32 = vmax.f32 %v738_v28, 0.0 }
 0x20b   : > { %v770_v35 = vmax.f32 %v730_v30, 0.0 }
 0x20c   : > { %v788_v36 = vpack.c.bf16 %v772_v32, %v771_v31 }
 0x20d   : > { %v787_v38 = vpack.c.bf16 %v770_v35, %v769_v33 }
 0x20f   : > { %1520 = vmatprep.mubr.bf16.mxu0 %v787_v38 }
 0x210   : > { %1521 = vmatmul.mubr.bf16.gmra.mrb[44].mxu0 %v788_v36 }
 0x2ab   : > { %v1494_v40 = vpop.f32.mrb[16].mxu0 }
 0x2ac   : > { %v884_v41 = vadd.f32 %v1494_v40, %v1907_v39  ;;  %v875_v42 = vpop.f32.mrb[17].mxu0 }
 0x2ad   : > { %v876_v43 = vadd.f32 %v1907_v39, %v875_v42  ;;  %v1495_v34 = vpop.f32.mrb[18].mxu0 }
 0x2ae   : > { %v1004_v45 = vmax.f32 %v884_v41, 0.0  ;;  %v887_v46 = vadd.f32 %v1495_v34, %v1907_v39  ;;  %v878_v47 = vpop.f32.mrb[19].mxu0 }
 0x2af   : > { %v1002_v48 = vmax.f32 %v876_v43, 0.0  ;;  %v879_v49 = vadd.f32 %v1907_v39, %v878_v47 }
 0x2b0   : > { %v1005_v50 = vmax.f32 %v887_v46, 0.0  ;;  %v1040_v63 = vmul.f32 %v1914_v44, %v1004_v45 }
 0x2b1   : > { %v1003_v37 = vmax.f32 %v879_v49, 0.0  ;;  %v1038_v51 = vmul.f32 %v1914_v44, %v1002_v48 }
 0x2b2   : > { %1074 = vadd.xlane.f32.xlu1 %v1040_v63  ;;  %v1041_v55 = vmul.f32 %v1914_v44, %v1005_v50 }
 0x2b3   : > { %v1498_v52 = vpop.f32.mrb[20].mxu0  ;;  %1070 = vadd.xlane.f32.xlu0 %v1038_v51  ;;  %v1039_v58 = vmul.f32 %v1914_v44, %v1003_v37 }
 0x2b4   : > { %v900_v53 = vadd.f32 %v1498_v52, %v1907_v39  ;;  %v891_v54 = vpop.f32.mrb[21].mxu0 }
 0x2b5   : > { %v892_v56 = vadd.f32 %v1907_v39, %v891_v54  ;;  %v1499_v57 = vpop.f32.mrb[22].mxu0 }
 0x2b6   : > { %v1008_v59 = vmax.f32 %v900_v53, 0.0  ;;  %v903_v60 = vadd.f32 %v1499_v57, %v1907_v39  ;;  %1076 = vadd.xlane.f32.xlu1 %v1041_v55  ;;  %v894_v61 = vpop.f32.mrb[23].mxu0 }
 0x2b7   : > { %v895_v62 = vadd.f32 %v1907_v39, %v894_v61  ;;  %1072 = vadd.xlane.f32.xlu0 %v1039_v58  ;;  %v1006_v2 = vmax.f32 %v892_v56, 0.0 }
 0x2b8   : > { %v1009_v0 = vmax.f32 %v903_v60, 0.0  ;;  %v1044_v1 = vmul.f32 %v1914_v44, %v1008_v59 }
 0x2b9   : > { %v1007_v3 = vmax.f32 %v895_v62, 0.0  ;;  %v1042_v10 = vmul.f32 %v1914_v44, %v1006_v2 }
 0x2ba   : > { %v1045_v4 = vmul.f32 %v1914_v44, %v1009_v0 }
 0x2bb   : > { %v1502_v5 = vpop.f32.mrb[24].mxu0  ;;  %1082 = vadd.xlane.f32.xlu0 %v1044_v1  ;;  %v1043_v14 = vmul.f32 %v1914_v44, %v1007_v3 }
 0x2bc   : > { %v916_v6 = vadd.f32 %v1502_v5, %v1907_v39  ;;  %1084 = vadd.xlane.f32.xlu1 %v1045_v4  ;;  %v907_v7 = vpop.f32.mrb[25].mxu0 }
 0x2bd   : > { %v908_v8 = vadd.f32 %v1907_v39, %v907_v7  ;;  %v1503_v9 = vpop.f32.mrb[26].mxu0 }
 0x2be   : > { %v1012_v11 = vmax.f32 %v916_v6, 0.0  ;;  %v919_v12 = vadd.f32 %v1503_v9, %v1907_v39  ;;  %v910_v13 = vpop.f32.mrb[27].mxu0 }
 0x2bf   : > { %v911_v15 = vadd.f32 %v1907_v39, %v910_v13  ;;  %1078 = vadd.xlane.f32.xlu0 %v1042_v10  ;;  %v1010_v18 = vmax.f32 %v908_v8, 0.0 }
 0x2c0   : > { %v1013_v16 = vmax.f32 %v919_v12, 0.0  ;;  %1080 = vadd.xlane.f32.xlu1 %v1043_v14  ;;  %v1048_v17 = vmul.f32 %v1914_v44, %v1012_v11 }
 0x2c1   : > { %v1011_v19 = vmax.f32 %v911_v15, 0.0  ;;  %v1046_v26 = vmul.f32 %v1914_v44, %v1010_v18 }
 0x2c2   : > { %v1049_v20 = vmul.f32 %v1914_v44, %v1013_v16 }
 0x2c3   : > { %v1506_v21 = vpop.f32.mrb[28].mxu0  ;;  %1090 = vadd.xlane.f32.xlu0 %v1048_v17  ;;  %v1047_v30 = vmul.f32 %v1914_v44, %v1011_v19 }
 0x2c4   : > { %v932_v22 = vadd.f32 %v1506_v21, %v1907_v39  ;;  %v923_v23 = vpop.f32.mrb[29].mxu0  ;;  %1092 = vadd.xlane.f32.xlu1 %v1049_v20 }
 0x2c5   : > { %v924_v24 = vadd.f32 %v1907_v39, %v923_v23  ;;  %v1507_v25 = vpop.f32.mrb[30].mxu0 }
 0x2c6   : > { %v1016_v27 = vmax.f32 %v932_v22, 0.0  ;;  %v935_v28 = vadd.f32 %v1507_v25, %v1907_v39  ;;  %v926_v29 = vpop.f32.mrb[31].mxu0 }
 0x2c7   : > { %v927_v31 = vadd.f32 %v1907_v39, %v926_v29  ;;  %1086 = vadd.xlane.f32.xlu0 %v1046_v26  ;;  %v1014_v35 = vmax.f32 %v924_v24, 0.0 }
 0x2c8   : > { %v1017_v32 = vmax.f32 %v935_v28, 0.0  ;;  %1088 = vadd.xlane.f32.xlu1 %v1047_v30  ;;  %v1052_v33 = vmul.f32 %v1914_v44, %v1016_v27 }
 0x2c9   : > { %v1015_v36 = vmax.f32 %v927_v31, 0.0  ;;  %v1050_v45 = vmul.f32 %v1914_v44, %v1014_v35 }
 0x2ca   : > { %v1053_v38 = vmul.f32 %v1914_v44, %v1017_v32 }
 0x2cb   : > { %v1510_v40 = vpop.f32.mrb[32].mxu0  ;;  %1098 = vadd.xlane.f32.xlu0 %v1052_v33  ;;  %v1051_v49 = vmul.f32 %v1914_v44, %v1015_v36 }
 0x2cc   : > { %v948_v41 = vadd.f32 %v1510_v40, %v1907_v39  ;;  %v939_v42 = vpop.f32.mrb[33].mxu0  ;;  %1100 = vadd.xlane.f32.xlu1 %v1053_v38 }
 0x2cd   : > { %v940_v43 = vadd.f32 %v1907_v39, %v939_v42  ;;  %v1511_v34 = vpop.f32.mrb[34].mxu0 }
 0x2ce   : > { %v1020_v46 = vmax.f32 %v948_v41, 0.0  ;;  %v951_v47 = vadd.f32 %v1511_v34, %v1907_v39  ;;  %v942_v48 = vpop.f32.mrb[35].mxu0 }
 0x2cf   : > { %v943_v50 = vadd.f32 %v1907_v39, %v942_v48  ;;  %1094 = vadd.xlane.f32.xlu0 %v1050_v45  ;;  %v1018_v51 = vmax.f32 %v940_v43, 0.0 }
 0x2d0   : > { %v1021_v63 = vmax.f32 %v951_v47, 0.0  ;;  %1096 = vadd.xlane.f32.xlu1 %v1051_v49  ;;  %v1056_v37 = vmul.f32 %v1914_v44, %v1020_v46 }
 0x2d1   : > { %v1019_v52 = vmax.f32 %v943_v50, 0.0  ;;  %v1054_v59 = vmul.f32 %v1914_v44, %v1018_v51 }
 0x2d2   : > { %v1057_v53 = vmul.f32 %v1914_v44, %v1021_v63 }
 0x2d3   : > { %v1514_v54 = vpop.f32.mrb[36].mxu0  ;;  %1106 = vadd.xlane.f32.xlu0 %v1056_v37  ;;  %v1055_v0 = vmul.f32 %v1914_v44, %v1019_v52 }
 0x2d4   : > { %v964_v55 = vadd.f32 %v1514_v54, %v1907_v39  ;;  %v955_v56 = vpop.f32.mrb[37].mxu0  ;;  %1108 = vadd.xlane.f32.xlu1 %v1057_v53 }
 0x2d5   : > { %v956_v57 = vadd.f32 %v1907_v39, %v955_v56  ;;  %v1515_v58 = vpop.f32.mrb[38].mxu0 }
 0x2d6   : > { %v1024_v60 = vmax.f32 %v964_v55, 0.0  ;;  %v967_v61 = vadd.f32 %v1515_v58, %v1907_v39  ;;  %v958_v62 = vpop.f32.mrb[39].mxu0 }
 0x2d7   : > { %v959_v1 = vadd.f32 %v1907_v39, %v958_v62  ;;  %1102 = vadd.xlane.f32.xlu0 %v1054_v59  ;;  %v1022_v4 = vmax.f32 %v956_v57, 0.0 }
 0x2d8   : > { %v1025_v2 = vmax.f32 %v967_v61, 0.0  ;;  %1104 = vadd.xlane.f32.xlu1 %v1055_v0  ;;  %v1060_v3 = vmul.f32 %v1914_v44, %v1024_v60 }
 0x2d9   : > { %v1023_v5 = vmax.f32 %v959_v1, 0.0  ;;  %v1058_v12 = vmul.f32 %v1914_v44, %v1022_v4 }
 0x2da   : > { %v1061_v6 = vmul.f32 %v1914_v44, %v1025_v2 }
 0x2db   : > { %v1518_v7 = vpop.f32.mrb[40].mxu0  ;;  %1114 = vadd.xlane.f32.xlu0 %v1060_v3  ;;  %v1059_v16 = vmul.f32 %v1914_v44, %v1023_v5 }
 0x2dc   : > { %v980_v8 = vadd.f32 %v1518_v7, %v1907_v39  ;;  %v971_v9 = vpop.f32.mrb[41].mxu0  ;;  %1116 = vadd.xlane.f32.xlu1 %v1061_v6 }
 0x2dd   : > { %v972_v10 = vadd.f32 %v1907_v39, %v971_v9  ;;  %v1519_v11 = vpop.f32.mrb[42].mxu0 }
 0x2de   : > { %v1028_v13 = vmax.f32 %v980_v8, 0.0  ;;  %v983_v14 = vadd.f32 %v1519_v11, %v1907_v39  ;;  %v974_v15 = vpop.f32.mrb[43].mxu0 }
 0x2df   : > { %v975_v17 = vadd.f32 %v1907_v39, %v974_v15  ;;  %1110 = vadd.xlane.f32.xlu0 %v1058_v12  ;;  %v1026_v20 = vmax.f32 %v972_v10, 0.0 }
 0x2e0   : > { %v1029_v18 = vmax.f32 %v983_v14, 0.0  ;;  %1112 = vadd.xlane.f32.xlu1 %v1059_v16  ;;  %v1064_v19 = vmul.f32 %v1914_v44, %v1028_v13 }
 0x2e1   : > { %v1027_v21 = vmax.f32 %v975_v17, 0.0  ;;  %v1062_v28 = vmul.f32 %v1914_v44, %v1026_v20 }
 0x2e2   : > { %v1065_v22 = vmul.f32 %v1914_v44, %v1029_v18 }
 0x2e3   : > { %v1522_v23 = vpop.f32.mrb[44].mxu0  ;;  %1122 = vadd.xlane.f32.xlu0 %v1064_v19  ;;  %v1063_v30 = vmul.f32 %v1914_v44, %v1027_v21 }
 0x2e4   : > { %v987_v24 = vpop.f32.mrb[45].mxu0  ;;  %1124 = vadd.xlane.f32.xlu1 %v1065_v22  ;;  %v996_v25 = vadd.f32 %v1522_v23, %v1907_v39 }
 0x2e5   : > { %v988_v26 = vadd.f32 %v1907_v39, %v987_v24  ;;  %v1523_v27 = vpop.f32.mrb[46].mxu0 }
 0x2e6   : > { %v990_v29 = vpop.f32.mrb[47].mxu0  ;;  %v999_v32 = vadd.f32 %v1523_v27, %v1907_v39  ;;  %v1032_v35 = vmax.f32 %v996_v25, 0.0 }
 0x2e7   : > { %v1030_v31 = vmax.f32 %v988_v26, 0.0  ;;  %v991_v33 = vadd.f32 %v1907_v39, %v990_v29  ;;  %1118 = vadd.xlane.f32.xlu0 %v1062_v28  ;;  %v1984_v39 = vld [vmem:[%s2106_s2 + $0x4] ss:$0 sm:$0xff] }
 0x2e8   : > { %1120 = vadd.xlane.f32.xlu1 %v1063_v30  ;;  %v1033_v40 = vmax.f32 %v999_v32, 0.0  ;;  %v1068_v42 = vmul.f32 %v1914_v44, %v1032_v35 }
 0x2e9   : > { %v1031_v36 = vmax.f32 %v991_v33, 0.0  ;;  %v1066_v38 = vmul.f32 %v1914_v44, %v1030_v31 }
 0x2ea   : > { %v1069_v43 = vmul.f32 %v1914_v44, %v1033_v40 }
 0x2eb   : > { %1126 = vadd.xlane.f32.xlu0 %v1066_v38  ;;  %v1067_v41 = vmul.f32 %v1914_v44, %v1031_v36 }
 0x2ed   : > { %1128 = vadd.xlane.f32.xlu1 %v1067_v41 }
 0x2ef   : > { %1130 = vadd.xlane.f32.xlu0 %v1068_v42 }
 0x2f1   : > { %1132 = vadd.xlane.f32.xlu1 %v1069_v43 }
 0x33f   : > { %v1075_v34 = vpop.xlane.xlu1 %1074 }
 0x340   : > { %v1140_v45 = vadd.f32 %v1984_v39, %v1075_v34  ;;  %v1071_v46 = vpop.xlane.xlu0 %1070 }
 0x341   : > { %v1138_v47 = vadd.f32 %v1984_v39, %v1071_v46 }
 0x342   : > { %1172 = vst [vmem:[%s1988_s17 + $0x10] sm:$0xff] %v1140_v45 }
 0x343   : > { %1170 = vst [vmem:[%s1988_s17] sm:$0xff] %v1138_v47  ;;  %v1077_v44 = vpop.xlane.xlu1 %1076 }
 0x344   : > { %v1141_v48 = vadd.f32 %v1984_v39, %v1077_v44  ;;  %v1073_v49 = vpop.xlane.xlu0 %1072 }
 0x345   : > { %v1139_v50 = vadd.f32 %v1984_v39, %v1073_v49 }
 0x346   : > { %1173 = vst [vmem:[%s1988_s17 + $0x18] sm:$0xff] %v1141_v48 }
 0x347   : > { %1171 = vst [vmem:[%s1988_s17 + $0x8] sm:$0xff] %v1139_v50 }
 0x348   : > { %v1083_v63 = vpop.xlane.xlu0 %1082 }
 0x349   : > { %v1144_v37 = vadd.f32 %v1984_v39, %v1083_v63  ;;  %v1085_v51 = vpop.xlane.xlu1 %1084 }
 0x34a   : > { %v1145_v52 = vadd.f32 %v1984_v39, %v1085_v51 }
 0x34b   : > { %1176 = vst [vmem:[%s1988_s17 + $0x30] sm:$0xff] %v1144_v37 }
 0x34c   : > { %1177 = vst [vmem:[%s1988_s17 + $0x38] sm:$0xff] %v1145_v52  ;;  %v1079_v53 = vpop.xlane.xlu0 %1078 }
 0x34d   : > { %v1142_v54 = vadd.f32 %v1984_v39, %v1079_v53  ;;  %v1081_v55 = vpop.xlane.xlu1 %1080 }
 0x34e   : > { %v1143_v56 = vadd.f32 %v1984_v39, %v1081_v55 }
 0x34f   : > { %1174 = vst [vmem:[%s1988_s17 + $0x20] sm:$0xff] %v1142_v54 }
 0x350   : > { %1175 = vst [vmem:[%s1988_s17 + $0x28] sm:$0xff] %v1143_v56  ;;  %v1091_v57 = vpop.xlane.xlu0 %1090 }
 0x351   : > { %v1148_v58 = vadd.f32 %v1984_v39, %v1091_v57  ;;  %v1093_v59 = vpop.xlane.xlu1 %1092 }
 0x352   : > { %v1149_v60 = vadd.f32 %v1984_v39, %v1093_v59 }
 0x353   : > { %1180 = vst [vmem:[%s1988_s17 + $0x50] sm:$0xff] %v1148_v58 }
 0x354   : > { %1181 = vst [vmem:[%s1988_s17 + $0x58] sm:$0xff] %v1149_v60  ;;  %v1087_v61 = vpop.xlane.xlu0 %1086 }
 0x355   : > { %v1146_v62 = vadd.f32 %v1984_v39, %v1087_v61  ;;  %v1089_v0 = vpop.xlane.xlu1 %1088 }
 0x356   : > { %v1147_v1 = vadd.f32 %v1984_v39, %v1089_v0 }
 0x357   : > { %1178 = vst [vmem:[%s1988_s17 + $0x40] sm:$0xff] %v1146_v62 }
 0x358   : > { %1179 = vst [vmem:[%s1988_s17 + $0x48] sm:$0xff] %v1147_v1  ;;  %v1099_v2 = vpop.xlane.xlu0 %1098 }
 0x359   : > { %v1152_v3 = vadd.f32 %v1984_v39, %v1099_v2  ;;  %v1101_v4 = vpop.xlane.xlu1 %1100 }
 0x35a   : > { %v1153_v5 = vadd.f32 %v1984_v39, %v1101_v4 }
 0x35b   : > { %1184 = vst [vmem:[%s1988_s17 + $0x70] sm:$0xff] %v1152_v3 }
 0x35c   : > { %1185 = vst [vmem:[%s1988_s17 + $0x78] sm:$0xff] %v1153_v5  ;;  %v1095_v6 = vpop.xlane.xlu0 %1094 }
 0x35d   : > { %v1150_v7 = vadd.f32 %v1984_v39, %v1095_v6  ;;  %v1097_v8 = vpop.xlane.xlu1 %1096 }
 0x35e   : > { %v1151_v9 = vadd.f32 %v1984_v39, %v1097_v8 }
 0x35f   : > { %1182 = vst [vmem:[%s1988_s17 + $0x60] sm:$0xff] %v1150_v7 }
 0x360   : > { %1183 = vst [vmem:[%s1988_s17 + $0x68] sm:$0xff] %v1151_v9  ;;  %v1107_v10 = vpop.xlane.xlu0 %1106 }
 0x361   : > { %v1156_v11 = vadd.f32 %v1984_v39, %v1107_v10  ;;  %v1109_v12 = vpop.xlane.xlu1 %1108 }
 0x362   : > { %v1157_v13 = vadd.f32 %v1984_v39, %v1109_v12 }
 0x363   : > { %1188 = vst [vmem:[%s1988_s17 + $0x90] sm:$0xff] %v1156_v11 }
 0x364   : > { %1189 = vst [vmem:[%s1988_s17 + $0x98] sm:$0xff] %v1157_v13  ;;  %v1103_v14 = vpop.xlane.xlu0 %1102 }
 0x365   : > { %v1154_v15 = vadd.f32 %v1984_v39, %v1103_v14  ;;  %v1105_v16 = vpop.xlane.xlu1 %1104 }
 0x366   : > { %v1155_v17 = vadd.f32 %v1984_v39, %v1105_v16 }
 0x367   : > { %1186 = vst [vmem:[%s1988_s17 + $0x80] sm:$0xff] %v1154_v15 }
 0x368   : > { %1187 = vst [vmem:[%s1988_s17 + $0x88] sm:$0xff] %v1155_v17  ;;  %v1115_v18 = vpop.xlane.xlu0 %1114 }
 0x369   : > { %v1160_v19 = vadd.f32 %v1984_v39, %v1115_v18  ;;  %v1117_v20 = vpop.xlane.xlu1 %1116 }
 0x36a   : > { %v1161_v21 = vadd.f32 %v1984_v39, %v1117_v20 }
 0x36b   : > { %1192 = vst [vmem:[%s1988_s17 + $0xb0] sm:$0xff] %v1160_v19 }
 0x36c   : > { %1193 = vst [vmem:[%s1988_s17 + $0xb8] sm:$0xff] %v1161_v21  ;;  %v1111_v22 = vpop.xlane.xlu0 %1110 }
 0x36d   : > { %v1158_v23 = vadd.f32 %v1984_v39, %v1111_v22  ;;  %v1113_v24 = vpop.xlane.xlu1 %1112 }
 0x36e   : > { %v1159_v25 = vadd.f32 %v1984_v39, %v1113_v24 }
 0x36f   : > { %1190 = vst [vmem:[%s1988_s17 + $0xa0] sm:$0xff] %v1158_v23 }
 0x370   : > { %1191 = vst [vmem:[%s1988_s17 + $0xa8] sm:$0xff] %v1159_v25  ;;  %v1123_v26 = vpop.xlane.xlu0 %1122 }
 0x371   : > { %v1164_v27 = vadd.f32 %v1984_v39, %v1123_v26  ;;  %v1125_v28 = vpop.xlane.xlu1 %1124 }
 0x372   : > { %v1165_v29 = vadd.f32 %v1984_v39, %v1125_v28 }
 0x373   : > { %1196 = vst [vmem:[%s1988_s17 + $0xd0] sm:$0xff] %v1164_v27 }
 0x374   : > { %1197 = vst [vmem:[%s1988_s17 + $0xd8] sm:$0xff] %v1165_v29  ;;  %v1119_v30 = vpop.xlane.xlu0 %1118 }
 0x375   : > { %v1162_v31 = vadd.f32 %v1984_v39, %v1119_v30  ;;  %v1121_v32 = vpop.xlane.xlu1 %1120 }
 0x376   : > { %v1163_v33 = vadd.f32 %v1984_v39, %v1121_v32 }
 0x377   : > { %1194 = vst [vmem:[%s1988_s17 + $0xc0] sm:$0xff] %v1162_v31 }
 0x378   : > { %1195 = vst [vmem:[%s1988_s17 + $0xc8] sm:$0xff] %v1163_v33  ;;  %v1127_v35 = vpop.xlane.xlu0 %1126 }
 0x379   : > { %v1166_v36 = vadd.f32 %v1984_v39, %v1127_v35 }
 0x37a   : > { %v1129_v38 = vpop.xlane.xlu1 %1128 }
 0x37b   : > { %1198 = vst [vmem:[%s1988_s17 + $0xe0] sm:$0xff] %v1166_v36  ;;  %v1167_v40 = vadd.f32 %v1984_v39, %v1129_v38 }
 0x37c   : > { %v1131_v41 = vpop.xlane.xlu0 %1130 }
 0x37d   : > { %1199 = vst [vmem:[%s1988_s17 + $0xe8] sm:$0xff] %v1167_v40  ;;  %v1168_v42 = vadd.f32 %v1984_v39, %v1131_v41 }
 0x37e   : > { %v1133_v43 = vpop.xlane.xlu1 %1132 }
 0x37f   : > { %1200 = vst [vmem:[%s1988_s17 + $0xf0] sm:$0xff] %v1168_v42  ;;  %v1169_v34 = vadd.f32 %v1984_v39, %v1133_v43 }
 0x381   : > { %1201 = vst [vmem:[%s1988_s17 + $0xf8] sm:$0xff] %v1169_v34 }
 0x382   : > { %1597 = shalt.err (!%p1594_p3)
}
 0x383   : > { %s1598_s4 = scalar_lea.hbm %s2054_s26, 4096  ;;  %s1602_s7 = scalar_lea.hbm %s2107_s3, 8192 }
 0x384   : > { %p1599_p4 = scmp.ne.s32.totalorder %s2054_s26, %s1598_s4  ;;  %p1603_p9 = scmp.lt.u32.totalorder %s2054_s26, %s2107_s3 }
 0x385   : > { %p1604_p10 = scmp.lt.u32.totalorder %s1602_s7, %s1598_s4  ;;  %p1606_p12 = scmp.lt.u32.totalorder %s1598_s4, %s2054_s26 }
 0x386   : > { %p1600_p7 = pnand %p1599_p4, %p1709_p5 }
 0x387   : > { %p1605_p11 = por %p1604_p10, %p1603_p9 }
 0x388   : > { %p1601_p8 = pneg %p1600_p7 }
 0x389   : > { %p1607_p13 = por %p1606_p12, %p1605_p11 }
 0x38b   : > { %p1608_p0 = pnand %p1607_p13, %p1601_p8 }
 0x38d   : > { %1611 = shalt.err (!%p1608_p0)
}
 0x38e   : > { %s1649_s10 = smov 128   ;;  %s1650_s11 = smov 8  }
 0x38f   : > { %1526 = dma.vmem_to_hbm [thread:$0]  (%p1709_p5), %s2056_s20, 4096, %s2054_s26, %s2063_s16, %s1649_s10, %s1649_s10, %s1650_s11  }
 0x390 PF: > { %p1532_p1 = scmp.ge.s32.totalorder %s1646_s15, 2  ;;  %s1231_s17 = sand.u32 1, %s1634_s12  }
 0x391   : > { %s1232_s19 = scalar_lea.sflag [#allocation3], %s1231_s17 }
 0x392   : > { %p1529_p2 = pnand %p1532_p1, %p1713_p6 }
 0x394   : > { %1629 = dma.done.wait (!%p1529_p2), %s1232_s19, 4096  }
 0x395   : > { %1631 = vsyncadd (!%p1529_p2), %s1232_s19, 4294963200  ;;  %p13_p3 = scmp.ge.s32.totalorder %s1696_s18, 4   ;;  %s2110_s12 = smov %s1638_s13 }
 0x396   : > { %s2111_s13 = smov %s1642_s14  ;;  %s2112_s14 = smov %s1707_s21 }
 0x397   : > { %s2113_s15 = smov %s1696_s18  ;;  %15 = sbr.rel (!%p13_p3) target bundleno = 3 (0x3), region = 67 }
 0x39e   :  { %1237 = vsyncpa [#allocation3], 1 }
 0x39f   :  { %1239 = vsyncpa [#allocation3 + $0x1], 1 }

</bundles_post_ra>
